<compile_context>
chip_gen: v6e
topology: v6e:2x2x1
jax: 0.10.0
libtpu: 0.0.40
codegen_flags: <defaults>
</compile_context>

<pallas_src>
import jax
import jax.numpy as jnp
from jax.experimental import pallas as pl
from jax.experimental.pallas import tpu as pltpu


def _model_kernel(x_ref, o_ref):
    # x_ref: (b, C, H, W); o_ref: (b, 3C, H, 4W)  (b = full B or 1 per grid step)
    # Compute relu(tanh(x)) once; replication is done on the result.
    y = jnp.maximum(jnp.tanh(x_ref[...]), 0.0)              # (b, C, H, W)

    # 4x width replication (== the two torch.cat(dim=3) calls), done once.
    # With 4*W a multiple of 128 this fills whole lane rows -> unmasked vst.
    y_w4 = jnp.concatenate([y, y, y, y], axis=3)             # (b, C, H, 4W)

    # 3x channel replication (torch.cat([x, x, x], dim=1)): three slab stores
    # on a leading (untiled) dim; every store writes full (8, 128) tiles.
    C = x_ref.shape[1]
    o_ref[:, 0 * C:1 * C, :, :] = y_w4
    o_ref[:, 1 * C:2 * C, :, :] = y_w4
    o_ref[:, 2 * C:3 * C, :, :] = y_w4


def _padded_bytes(shape, itemsize):
    """VMEM footprint with (8, 128) tiling padding on the last two dims."""
    *lead, s, l = shape
    s_p = -(-s // 8) * 8
    l_p = -(-l // 128) * 128
    n = itemsize * s_p * l_p
    for d in lead:
        n *= d
    return n


def model_forward(x, *, vmem_budget_bytes=32 << 20):
    B, C, H, W = x.shape
    out_shape = jax.ShapeDtypeStruct((B, 3 * C, H, 4 * W), x.dtype)
    itemsize = jnp.dtype(x.dtype).itemsize

    # Advisory cost hint: ~zero flops, one tanh per *input* element (computed
    # once), bytes = unpadded HBM traffic in + out.  Lets XLA overlap
    # surrounding HLO with this tiny custom call.
    in_bytes = B * C * H * W * itemsize
    out_bytes = B * 3 * C * H * 4 * W * itemsize
    cost = pl.CostEstimate(
        flops=B * 3 * C * H * 4 * W,        # relu compares on the output
        transcendentals=B * C * H * W,      # tanh computed once per input elem
        bytes_accessed=in_bytes + out_bytes,
    )

    # Lane-density check: the unmasked-store fast path needs 4*W % 128 == 0.
    # (Correct either way; non-multiples just take masked lane stores.)
    lane_dense = (4 * W) % 128 == 0
    del lane_dense  # informational; no padding inserted for the toy shape

    # Padded (tiled) VMEM residency for the gridless whole-resident plan.
    resident = _padded_bytes((B, C, H, W), itemsize) + _padded_bytes(
        (B, 3 * C, H, 4 * W), itemsize
    )

    if resident <= vmem_budget_bytes // 4:
        # Small problem: single gridless invocation, everything resident in
        # VMEM.  Any grid/pipelining would only add ~0.35 us/step overhead.
        return pl.pallas_call(
            _model_kernel,
            out_shape=out_shape,
            in_specs=[pl.BlockSpec(memory_space=pltpu.MemorySpace.VMEM)],
            out_specs=pl.BlockSpec(memory_space=pltpu.MemorySpace.VMEM),
            cost_estimate=cost,
        )(x)

    # Production-sized path: grid over B, block (1, C, H, W) -> (1, 3C, H, 4W).
    # Last block dims stay full-width (multiples of 128 when 4*W is), and the
    # parallel axis lets megacore chips (v7x: 2 TCs) shard the batch.
    return pl.pallas_call(
        _model_kernel,
        out_shape=out_shape,
        grid_spec=pltpu.PrefetchScalarGridSpec(
            num_scalar_prefetch=0,
            grid=(B,),
            in_specs=[pl.BlockSpec((1, C, H, W), lambda b: (b, 0, 0, 0))],
            out_specs=pl.BlockSpec((1, 3 * C, H, 4 * W), lambda b: (b, 0, 0, 0)),
        ),
        compiler_params=pltpu.CompilerParams(
            dimension_semantics=("parallel",),
            vmem_limit_bytes=vmem_budget_bytes,
        ),
        cost_estimate=cost,
    )(x)


if __name__ == "__main__":
    key = jax.random.PRNGKey(0)
    kx, kw = jax.random.split(key)

    # Small 4-D NCHW input consistent with the forward (dim=3 cat needs 4-D).
    # W = 32 so the replicated output width 4*W = 128 is exactly lane-dense.
    x = jax.random.normal(kx, (2, 4, 8, 32), dtype=jnp.float32)

    # Deterministic init of the module's parameter self.weight (4, 6).
    # It is never used in forward; kept only for module fidelity.
    weight = jax.random.normal(kw, (4, 6), dtype=jnp.float32)

    out = jax.block_until_ready(model_forward(x))

    # Pure-JAX reference of the exact PyTorch forward.
    z = jnp.concatenate([x, x, x], axis=1)
    r = jnp.tanh(z)
    r = jnp.concatenate([r, r], axis=3)
    r = jnp.concatenate([r, r], axis=3)
    ref = jnp.maximum(r, 0.0)

    assert out.shape == (2, 12, 8, 128), out.shape
    assert jnp.allclose(out, ref, atol=1e-5, rtol=1e-5), "mismatch vs reference"
    print("KERNEL_OK")
</pallas_src>

<mosaic_0001>
module attributes {stable_mosaic.version = 11 : i64} {
  func.func @_model_kernel(%arg0: memref<2x4x8x32xf32, #tpu.memory_space<vmem>>, %arg1: memref<2x12x8x128xf32, #tpu.memory_space<vmem>>) attributes {dimension_semantics = [], scalar_prefetch = 0 : i64, scratch_operands = 0 : i64, tpu.core_type = #tpu.core_type<tc>} {
    %c0 = arith.constant 0 : index
    %c0_0 = arith.constant 0 : index
    %c0_1 = arith.constant 0 : index
    %c0_2 = arith.constant 0 : index
    %0 = vector.load %arg0[%c0, %c0_0, %c0_1, %c0_2] : memref<2x4x8x32xf32, #tpu.memory_space<vmem>>, vector<2x4x8x32xf32>
    %1 = math.tanh %0 : vector<2x4x8x32xf32>
    %cst = arith.constant 0.000000e+00 : f32
    %2 = vector.broadcast %cst : f32 to vector<2x4x8x32xf32>
    %3 = arith.maximumf %1, %2 : vector<2x4x8x32xf32>
    %4 = tpu.concatenate %3, %3, %3, %3 in 3 : vector<2x4x8x32xf32>, vector<2x4x8x32xf32>, vector<2x4x8x32xf32>, vector<2x4x8x32xf32> -> vector<2x4x8x128xf32>
    %c0_3 = arith.constant 0 : index
    %c0_4 = arith.constant 0 : index
    %c0_5 = arith.constant 0 : index
    %c0_6 = arith.constant 0 : index
    %5 = vector.load %arg1[%c0_3, %c0_4, %c0_5, %c0_6] : memref<2x12x8x128xf32, #tpu.memory_space<vmem>>, vector<2x4x8x128xf32>
    tpu.vector_store %arg1[%c0_3, %c0_4, %c0_5, %c0_6], %4 {strides = array<i32>} : memref<2x12x8x128xf32, #tpu.memory_space<vmem>>, vector<2x4x8x128xf32>,
    %c0_7 = arith.constant 0 : index
    %c4 = arith.constant 4 : index
    %c0_8 = arith.constant 0 : index
    %c0_9 = arith.constant 0 : index
    %6 = vector.load %arg1[%c0_7, %c4, %c0_8, %c0_9] : memref<2x12x8x128xf32, #tpu.memory_space<vmem>>, vector<2x4x8x128xf32>
    tpu.vector_store %arg1[%c0_7, %c4, %c0_8, %c0_9], %4 {strides = array<i32>} : memref<2x12x8x128xf32, #tpu.memory_space<vmem>>, vector<2x4x8x128xf32>,
    %c0_10 = arith.constant 0 : index
    %c8 = arith.constant 8 : index
    %c0_11 = arith.constant 0 : index
    %c0_12 = arith.constant 0 : index
    %7 = vector.load %arg1[%c0_10, %c8, %c0_11, %c0_12] : memref<2x12x8x128xf32, #tpu.memory_space<vmem>>, vector<2x4x8x128xf32>
    tpu.vector_store %arg1[%c0_10, %c8, %c0_11, %c0_12], %4 {strides = array<i32>} : memref<2x12x8x128xf32, #tpu.memory_space<vmem>>, vector<2x4x8x128xf32>,
    return
  }
}

</mosaic_0001>

<bundles_post_ra>
// kernel: tpu_custom_call.1
= control target key start
LH: loop header
LB: loop body
LE: loop exit
PB: predicated region body
PF: predicated region fallthrough
CT: control target
= control target key end

     0   :  { %6 = vsyncpa [#allocation3], 0  ;;  %s353_s0 = inlined_call_operand.hbm [shape: f32[2,4,8,32], index: 0, kind: input, shape index: {}]   ;;  %s354_s1 = inlined_call_operand.hbm [shape: f32[2,12,8,128], index: 1, kind: output, shape index: {}]  }
   0x1   :  { %7 = vsyncpa [#allocation4], 0  ;;  %s264_s6 = smov [#allocation2]  }
   0x2   :  { %s13_s7 = sshll.u32 %s264_s6, 4  ;;  %s14_s7 = int_to_ptr.vmem [resolvable:$true] %s13_s7 }
   0x3   :  { %s228_s8 = scalar_lea.vmem %s14_s7, 1024  ;;  %p233_p1 = scmp.lt.s32.totalorder %s14_s7, %s14_s7 }
   0x4   :  { %p229_p0 = scmp.ne.s32.totalorder %s14_s7, %s228_s8  ;;  %p234_p2 = scmp.lt.s32.totalorder %s228_s8, %s228_s8 }
   0x6   :  { %p235_p3 = por %p234_p2, %p233_p1 }
   0x8   :  { %p236_p4 = pnand %p235_p3, %p229_p0 }
   0xa   :  { %239 = shalt.err (!%p236_p4)
}
   0xb   :  { %s265_s9 = smov 128   ;;  %s266_s10 = smov 8  }
   0xc   :  { %19 = dma.hbm_to_vmem [thread:$0]  %s353_s0, 1024, %s14_s7, [#allocation3], %s265_s9, %s265_s9, %s266_s10  }
   0xd   :  { %260 = dma.done.wait [#allocation3], 1024  }
   0xe   :  { %261 = vsyncadd [#allocation3], 4294966272  ;;  %v25_v0 = vld [vmem:[#allocation2 + $0x10] sm:$0xff]  ;;  %v23_v1 = vld [vmem:[#allocation2] sm:$0xff]  ;;  %s267_s0 = smov 32   ;;  %s268_s13 = smov 64  }
   0xf   :  { %v26_v2 = vld [vmem:[#allocation2 + $0x18] sm:$0xff]  ;;  %204 = vtanh.f32 %v25_v0  ;;  %v24_v3 = vld [vmem:[#allocation2 + $0x8] sm:$0xff]  ;;  %v27_v5 = vld [vmem:[#allocation2 + $0x20] sm:$0xff]  ;;  %s269_s14 = smov 96   ;;  %vm127_vm0 = vcmask 261120   ;;  %vm136_vm1 = vcmask 523264  }
  0x10   :  { %206 = vtanh.f32 %v23_v1  ;;  %v28_v4 = vld [vmem:[#allocation2 + $0x28] sm:$0xff]  ;;  %v30_v6 = vld [vmem:[#allocation2 + $0x38] sm:$0xff]  ;;  %v29_v7 = vld [vmem:[#allocation2 + $0x30] sm:$0xff]  ;;  %vm145_vm2 = vcmask 785408   ;;  %s270_s15 = smov [#allocation5]  }
  0x11   :  { %208 = vtanh.f32 %v26_v2  ;;  %s185_s16 = sshll.u32 %s270_s15, 4  ;;  %s186_s16 = int_to_ptr.vmem [resolvable:$true] %s185_s16 }
  0x12   :  { %210 = vtanh.f32 %v24_v3  ;;  %s240_s17 = scalar_lea.vmem %s186_s16, 3072  ;;  %p245_p6 = scmp.lt.s32.totalorder %s186_s16, %s186_s16 }
  0x13   :  { %212 = vtanh.f32 %v28_v4  ;;  %p241_p5 = scmp.ne.s32.totalorder %s186_s16, %s240_s17  ;;  %p246_p7 = scmp.lt.s32.totalorder %s240_s17, %s240_s17 }
  0x14   :  { %214 = vtanh.f32 %v27_v5 }
  0x15   :  { %216 = vtanh.f32 %v30_v6  ;;  %p247_p8 = por %p246_p7, %p245_p6 }
  0x16   :  { %218 = vtanh.f32 %v29_v7 }
  0x17   :  { %p248_p9 = pnand %p247_p8, %p241_p5 }
  0x1c   :  { %v205_v8 = vpop.eup %204 }
  0x1d   :  { %v207_v9 = vpop.eup %206  ;;  %v287_v10 = vmax.f32 %v205_v8, 0.0 }
  0x1e   :  { %v209_v11 = vpop.eup %208  ;;  %v39_v12 = vmax.f32 %v207_v9, 0.0 }
  0x1f   :  { %v211_v13 = vpop.eup %210  ;;  %59 = vrot.lane.b32.xlu1 %v287_v10, %s267_s0  ;;  %v290_v14 = vmax.f32 %v209_v11, 0.0 }
  0x20   :  { %v213_v15 = vpop.eup %212  ;;  %55 = vrot.lane.b32.xlu0 %v39_v12, %s267_s0  ;;  %v40_v16 = vmax.f32 %v211_v13, 0.0 }
  0x21   :  { %v215_v17 = vpop.eup %214  ;;  %v293_v18 = vmax.f32 %v213_v15, 0.0 }
  0x22   :  { %v217_v19 = vpop.eup %216  ;;  %v295_v20 = vmax.f32 %v215_v17, 0.0 }
  0x23   :  { %61 = vrot.lane.b32.xlu1 %v290_v14, %s267_s0  ;;  %v219_v21 = vpop.eup %218  ;;  %v298_v22 = vmax.f32 %v217_v19, 0.0 }
  0x24   :  { %57 = vrot.lane.b32.xlu0 %v40_v16, %s267_s0  ;;  %v301_v23 = vmax.f32 %v219_v21, 0.0 }
  0x27   :  { %65 = vrot.lane.b32.xlu1 %v293_v18, %s267_s0 }
  0x28   :  { %63 = vrot.lane.b32.xlu0 %v295_v20, %s267_s0 }
  0x2b   :  { %69 = vrot.lane.b32.xlu1 %v298_v22, %s267_s0 }
  0x2c   :  { %67 = vrot.lane.b32.xlu0 %v301_v23, %s267_s0 }
  0x2f   :  { %81 = vrot.lane.b32.xlu1 %v40_v16, %s268_s13 }
  0x30   :  { %79 = vrot.lane.b32.xlu0 %v39_v12, %s268_s13 }
  0x33   :  { %85 = vrot.lane.b32.xlu1 %v290_v14, %s268_s13 }
  0x34   :  { %83 = vrot.lane.b32.xlu0 %v287_v10, %s268_s13 }
  0x37   :  { %89 = vrot.lane.b32.xlu1 %v293_v18, %s268_s13 }
  0x38   :  { %87 = vrot.lane.b32.xlu0 %v295_v20, %s268_s13 }
  0x3b   :  { %93 = vrot.lane.b32.xlu1 %v298_v22, %s268_s13 }
  0x3c   :  { %91 = vrot.lane.b32.xlu0 %v301_v23, %s268_s13 }
  0x3f   :  { %105 = vrot.lane.b32.xlu1 %v40_v16, %s269_s14 }
  0x40   :  { %103 = vrot.lane.b32.xlu0 %v39_v12, %s269_s14 }
  0x43   :  { %109 = vrot.lane.b32.xlu1 %v290_v14, %s269_s14 }
  0x44   :  { %107 = vrot.lane.b32.xlu0 %v287_v10, %s269_s14 }
  0x47   :  { %113 = vrot.lane.b32.xlu1 %v293_v18, %s269_s14 }
  0x48   :  { %111 = vrot.lane.b32.xlu0 %v295_v20, %s269_s14 }
  0x4b   :  { %117 = vrot.lane.b32.xlu1 %v298_v22, %s269_s14 }
  0x4c   :  { %115 = vrot.lane.b32.xlu0 %v301_v23, %s269_s14 }
  0x91   :  { %v60_v24 = vpop.permute.xlu1 %59 }
  0x92   :  { %v56_v25 = vpop.permute.xlu0 %55  ;;  %v130_v49 = vsel %vm127_vm0, %v287_v10, %v60_v24 }
  0x93   :  { %v128_v41 = vsel %vm127_vm0, %v39_v12, %v56_v25 }
  0x95   :  { %v62_v26 = vpop.permute.xlu1 %61 }
  0x96   :  { %v58_v27 = vpop.permute.xlu0 %57  ;;  %v131_v48 = vsel %vm127_vm0, %v290_v14, %v62_v26 }
  0x97   :  { %v129_v40 = vsel %vm127_vm0, %v40_v16, %v58_v27 }
  0x99   :  { %v66_v28 = vpop.permute.xlu1 %65 }
  0x9a   :  { %v64_v29 = vpop.permute.xlu0 %63  ;;  %v133_v56 = vsel %vm127_vm0, %v293_v18, %v66_v28 }
  0x9b   :  { %v132_v57 = vsel %vm127_vm0, %v295_v20, %v64_v29 }
  0x9d   :  { %v70_v30 = vpop.permute.xlu1 %69 }
  0x9e   :  { %v68_v31 = vpop.permute.xlu0 %67  ;;  %v135_v0 = vsel %vm127_vm0, %v298_v22, %v70_v30 }
  0x9f   :  { %v134_v1 = vsel %vm127_vm0, %v301_v23, %v68_v31 }
  0xa1   :  { %v82_v32 = vpop.permute.xlu1 %81 }
  0xa2   :  { %v80_v33 = vpop.permute.xlu0 %79  ;;  %v138_v42 = vsel %vm136_vm1, %v129_v40, %v82_v32 }
  0xa3   :  { %v137_v44 = vsel %vm136_vm1, %v128_v41, %v80_v33 }
  0xa5   :  { %v86_v34 = vpop.permute.xlu1 %85 }
  0xa6   :  { %v84_v35 = vpop.permute.xlu0 %83  ;;  %v140_v50 = vsel %vm136_vm1, %v131_v48, %v86_v34 }
  0xa7   :  { %v139_v52 = vsel %vm136_vm1, %v130_v49, %v84_v35 }
  0xa9   :  { %v90_v36 = vpop.permute.xlu1 %89 }
  0xaa   :  { %v88_v37 = vpop.permute.xlu0 %87  ;;  %v142_v58 = vsel %vm136_vm1, %v133_v56, %v90_v36 }
  0xab   :  { %v141_v60 = vsel %vm136_vm1, %v132_v57, %v88_v37 }
  0xad   :  { %v94_v38 = vpop.permute.xlu1 %93 }
  0xae   :  { %v92_v39 = vpop.permute.xlu0 %91  ;;  %v144_v2 = vsel %vm136_vm1, %v135_v0, %v94_v38 }
  0xaf   :  { %v143_v4 = vsel %vm136_vm1, %v134_v1, %v92_v39 }
  0xb1   :  { %v106_v43 = vpop.permute.xlu1 %105 }
  0xb2   :  { %v147_v45 = vsel %vm145_vm2, %v138_v42, %v106_v43  ;;  %v104_v46 = vpop.permute.xlu0 %103 }
  0xb3   :  { %155 = vst [vmem:[#allocation5 + $0x8] sm:$0xff] %v147_v45  ;;  %164 = vst [vmem:[#allocation5 + $0x28] sm:$0xff] %v147_v45  ;;  %v146_v47 = vsel %vm145_vm2, %v137_v44, %v104_v46 }
  0xb4   :  { %173 = vst [vmem:[#allocation5 + $0x48] sm:$0xff] %v147_v45  ;;  %154 = vst [vmem:[#allocation5] sm:$0xff] %v146_v47 }
  0xb5   :  { %163 = vst [vmem:[#allocation5 + $0x20] sm:$0xff] %v146_v47  ;;  %172 = vst [vmem:[#allocation5 + $0x40] sm:$0xff] %v146_v47  ;;  %v110_v51 = vpop.permute.xlu1 %109 }
  0xb6   :  { %v149_v53 = vsel %vm145_vm2, %v140_v50, %v110_v51  ;;  %v108_v54 = vpop.permute.xlu0 %107 }
  0xb7   :  { %157 = vst [vmem:[#allocation5 + $0x18] sm:$0xff] %v149_v53  ;;  %166 = vst [vmem:[#allocation5 + $0x38] sm:$0xff] %v149_v53  ;;  %v148_v55 = vsel %vm145_vm2, %v139_v52, %v108_v54 }
  0xb8   :  { %175 = vst [vmem:[#allocation5 + $0x58] sm:$0xff] %v149_v53  ;;  %156 = vst [vmem:[#allocation5 + $0x10] sm:$0xff] %v148_v55 }
  0xb9   :  { %165 = vst [vmem:[#allocation5 + $0x30] sm:$0xff] %v148_v55  ;;  %174 = vst [vmem:[#allocation5 + $0x50] sm:$0xff] %v148_v55  ;;  %v114_v59 = vpop.permute.xlu1 %113 }
  0xba   :  { %v151_v61 = vsel %vm145_vm2, %v142_v58, %v114_v59  ;;  %v112_v62 = vpop.permute.xlu0 %111 }
  0xbb   :  { %159 = vst [vmem:[#allocation5 + $0x68] sm:$0xff] %v151_v61  ;;  %168 = vst [vmem:[#allocation5 + $0x88] sm:$0xff] %v151_v61  ;;  %v150_v63 = vsel %vm145_vm2, %v141_v60, %v112_v62 }
  0xbc   :  { %177 = vst [vmem:[#allocation5 + $0xa8] sm:$0xff] %v151_v61  ;;  %158 = vst [vmem:[#allocation5 + $0x60] sm:$0xff] %v150_v63 }
  0xbd   :  { %167 = vst [vmem:[#allocation5 + $0x80] sm:$0xff] %v150_v63  ;;  %176 = vst [vmem:[#allocation5 + $0xa0] sm:$0xff] %v150_v63  ;;  %v118_v3 = vpop.permute.xlu1 %117 }
  0xbe   :  { %v153_v5 = vsel %vm145_vm2, %v144_v2, %v118_v3  ;;  %v116_v6 = vpop.permute.xlu0 %115 }
  0xbf   :  { %161 = vst [vmem:[#allocation5 + $0x78] sm:$0xff] %v153_v5  ;;  %170 = vst [vmem:[#allocation5 + $0x98] sm:$0xff] %v153_v5  ;;  %v152_v7 = vsel %vm145_vm2, %v143_v4, %v116_v6 }
  0xc0   :  { %179 = vst [vmem:[#allocation5 + $0xb8] sm:$0xff] %v153_v5  ;;  %160 = vst [vmem:[#allocation5 + $0x70] sm:$0xff] %v152_v7 }
  0xc1   :  { %169 = vst [vmem:[#allocation5 + $0x90] sm:$0xff] %v152_v7  ;;  %178 = vst [vmem:[#allocation5 + $0xb0] sm:$0xff] %v152_v7 }
  0xc2   :  { %251 = shalt.err (!%p248_p9)
}
  0xc3   :  { %191 = dma.vmem_to_hbm [thread:$0]  %s186_s16, 3072, %s354_s1, [#allocation4], %s265_s9, %s265_s9, %s266_s10  }
  0xc4   :  { %262 = dma.done.wait [#allocation4], 3072  }
  0xc5   :  { %263 = vsyncadd [#allocation4], 4294964224 }
  0xc6   :  { %195 = vsyncpa [#allocation3], 1 }
  0xc7   :  { %196 = vsyncpa [#allocation4], 1 }

</bundles_post_ra>
